<compile_context>
chip_gen: v7x
topology: tpu7x:2x2x1
jax: 0.10.0
libtpu: 0.0.40
codegen_flags: <defaults>
</compile_context>

<pallas_src>
import functools

import jax
import jax.numpy as jnp
from jax.experimental import pallas as pl
from jax.experimental.pallas import tpu as pltpu

_MIB = 1024 * 1024
_NEG_BIG = -1e30  # bias for padded vocab columns (exp() underflows to 0)


def _round_up(n: int, m: int) -> int:
    return (n + m - 1) // m * m


def _vmem_budget_bytes() -> int:
    """Physical VMEM minus headroom for Mosaic internal scratch / semaphores."""
    try:
        cap = int(pltpu.get_tpu_info().vmem_capacity_bytes)
    except Exception:  # no device / API variation: assume v7x (smallest VMEM)
        cap = 64 * _MIB
    return max(cap - 16 * _MIB, 32 * _MIB)


def _plan_k(H: int, tk: int):
    """(H_pad, tk_eff).  tk_eff is a 128-multiple divisor of the padded H, or
    the full H when it already fits in one block."""
    tk = max(128, min(tk, 2048))
    if H <= tk:
        return H, H
    H_pad = _round_up(H, 128)
    tk_eff = 128
    for t in range(tk // 128, 0, -1):
        if H_pad % (t * 128) == 0:
            tk_eff = t * 128
            break
    return H_pad, tk_eff


def _plan_v(V: int, tv: int):
    """(V_pad, tv_eff).  V padded to a multiple of 128 (lane-dense stores); if
    it does not fit a single tile, pad to a multiple of tv_eff so every V tile
    still contains at least one real column (keeps the row-max finite)."""
    tv = _round_up(max(128, min(tv, 2048)), 128)
    V_128 = _round_up(V, 128)
    if V_128 <= tv:
        return V_128, V_128
    return _round_up(V, tv), tv


def _choose_tm(M: int, tm: int, sublane: int) -> int:
    """Balanced M tiles; split a single big tile in two so the 'parallel' M
    axis can shard across both TensorCores (v7x megacore)."""
    tm = max(sublane, min(tm, 1024))
    m_aligned = _round_up(M, sublane)
    tm_cap = max(min(_round_up(tm, sublane), m_aligned), sublane)
    n_tiles = pl.cdiv(m_aligned, tm_cap)
    if n_tiles == 1 and m_aligned >= 512:
        n_tiles = 2
    return _round_up(pl.cdiv(m_aligned, n_tiles), sublane)


# --------------------------------------------------------------------------
# Kernels
# --------------------------------------------------------------------------
def _fused_logsoftmax_kernel(x_ref, w_ref, b_ref, o_ref, acc_ref):
    """Single-pass path (full padded vocab resident).  Grid = (M tiles, K tiles)."""
    k = pl.program_id(1)
    partial = jnp.dot(x_ref[...], w_ref[...], preferred_element_type=jnp.float32)

    @pl.when(k == 0)
    def _():
        # Init the accumulator with the first partial product and fold in the
        # bias: saves a zero-fill write and the epilogue bias add.
        acc_ref[...] = partial + b_ref[...]

    @pl.when(k > 0)
    def _():
        acc_ref[...] += partial

    @pl.when(k == pl.num_programs(1) - 1)
    def _():
        logits = acc_ref[...]
        row_max = jnp.max(logits, axis=-1, keepdims=True)
        shifted = logits - row_max
        acc_ref[...] = shifted  # reuse the accumulator for the shifted logits
        lse = jnp.log(jnp.sum(jnp.exp(shifted), axis=-1, keepdims=True))
        o_ref[...] = (acc_ref[...] - lse).astype(o_ref.dtype)


def _logits_lse_kernel(x_ref, w_ref, b_ref, logits_ref, lse_ref,
                       acc_ref, m_ref, l_ref):
    """V-tiled pass 1.  Grid = (M tiles, V tiles, K tiles).
    Writes raw logits per (m, v) tile plus an online log-sum-exp per M tile."""
    j = pl.program_id(1)
    k = pl.program_id(2)
    last_j = pl.num_programs(1) - 1
    last_k = pl.num_programs(2) - 1

    @pl.when(jnp.logical_and(j == 0, k == 0))
    def _():
        m_ref[...] = jnp.full_like(m_ref, -jnp.inf)
        l_ref[...] = jnp.zeros_like(l_ref)

    partial = jnp.dot(x_ref[...], w_ref[...], preferred_element_type=jnp.float32)

    @pl.when(k == 0)
    def _():
        acc_ref[...] = partial + b_ref[...]

    @pl.when(k > 0)
    def _():
        acc_ref[...] += partial

    @pl.when(k == last_k)
    def _():
        logits = acc_ref[...]
        logits_ref[...] = logits
        tile_max = jnp.max(logits, axis=-1, keepdims=True)
        m_new = jnp.maximum(m_ref[...], tile_max)
        l_ref[...] = (l_ref[...] * jnp.exp(m_ref[...] - m_new)
                      + jnp.sum(jnp.exp(logits - m_new), axis=-1, keepdims=True))
        m_ref[...] = m_new

    @pl.when(jnp.logical_and(j == last_j, k == last_k))
    def _():
        lse_ref[...] = m_ref[...] + jnp.log(l_ref[...])


def _normalize_kernel(logits_ref, lse_ref, o_ref):
    """V-tiled pass 2: log_probs = logits - lse (memory-bound elementwise)."""
    o_ref[...] = (logits_ref[...] - lse_ref[...]).astype(o_ref.dtype)


# --------------------------------------------------------------------------
# Wrappers
# --------------------------------------------------------------------------
def prepare_params(w, b, *, compute_dtype=jnp.bfloat16, tk=1024, tv=1024):
    """One-time weight preparation (cast + pad).  Do this OUTSIDE the per-step
    hot path so the forward never re-streams the H x V weight just to cast/pad.

    w: [hidden, vocab] (transpose of PyTorch nn.Linear's [vocab, hidden]).
    b: [vocab].
    Returns (w_prepared [H_pad, V_pad] compute_dtype, b_prepared [1, V_pad] f32).
    """
    H, V = w.shape
    H_pad, _ = _plan_k(H, tk)
    V_pad, _ = _plan_v(V, tv)
    w2 = w.astype(compute_dtype)
    b2 = b.astype(jnp.float32).reshape(1, V)
    if H_pad != H:
        w2 = jnp.pad(w2, ((0, H_pad - H), (0, 0)))
    if V_pad != V:
        w2 = jnp.pad(w2, ((0, 0), (0, V_pad - V)))
        # -1e30 on pad columns -> exp underflows to 0, real columns unaffected.
        b2 = jnp.pad(b2, ((0, 0), (0, V_pad - V)), constant_values=_NEG_BIG)
    return w2, b2


@functools.partial(
    jax.jit,
    static_argnames=("vocab_size", "tm", "tk", "tv", "out_dtype", "force_v_tiling"))
def masked_log_model_prepared(x, w_prepared, b_prepared, *, vocab_size,
                              tm=512, tk=1024, tv=1024, out_dtype=None,
                              force_v_tiling=False):
    """x: [B, S, H]; (w_prepared, b_prepared) from prepare_params (same tk/tv).
    Returns [B, S, vocab_size] log-probs (dtype = out_dtype or x.dtype)."""
    B, S, H = x.shape
    V = vocab_size
    compute_dtype = w_prepared.dtype
    out_dtype = x.dtype if out_dtype is None else out_dtype

    in_item = jnp.dtype(compute_dtype).itemsize
    out_item = jnp.dtype(out_dtype).itemsize
    sublane = 32 // in_item  # 8 for f32, 16 for bf16

    H_pad, tk_eff = _plan_k(H, tk)
    V_pad, tv_eff = _plan_v(V, tv)
    assert w_prepared.shape == (H_pad, V_pad), (
        "w_prepared does not match this tk/tv config; re-run prepare_params "
        f"with tk={tk}, tv={tv} (got {w_prepared.shape}, want {(H_pad, V_pad)})")
    assert b_prepared.shape == (1, V_pad)

    M = B * S
    tm_eff = _choose_tm(M, tm, sublane)
    num_k = H_pad // tk_eff
    num_v = V_pad // tv_eff

    budget = _vmem_budget_bytes()

    def _single_pass_bytes(tm_):
        return (2 * tm_ * tk_eff * in_item        # x tiles (double-buffered)
                + 2 * tk_eff * V_pad * in_item    # w slab
                + 2 * V_pad * 4                   # bias
                + 2 * tm_ * V_pad * out_item      # output tiles
                + 3 * tm_ * V_pad * 4)            # f32 acc + epilogue temporaries

    def _tiled_bytes(tm_):
        return (2 * tm_ * tk_eff * in_item
                + 2 * tk_eff * tv_eff * in_item
                + 2 * tv_eff * 4
                + 2 * tm_ * tv_eff * 4            # f32 logits tile out
                + 3 * tm_ * tv_eff * 4            # acc + epilogue temporaries
                + 4 * tm_ * 4)                    # lse out + m/l running scratch

    use_single = (not force_v_tiling) and _single_pass_bytes(tm_eff) <= budget
    if not use_single:
        # Safety net for extreme tile overrides: shrink tm until the tiled
        # footprint fits the budget.
        while _tiled_bytes(tm_eff) > budget and tm_eff > sublane:
            tm_eff = max(_round_up(tm_eff // 2, sublane), sublane)

    M_pad = _round_up(M, tm_eff)
    grid_m = M_pad // tm_eff

    # Activations: reshape + cast + pad (activation-sized; cheap per step).
    x2 = x.reshape(M, H).astype(compute_dtype)
    if M_pad != M or H_pad != H:
        x2 = jnp.pad(x2, ((0, M_pad - M), (0, H_pad - H)))

    w2, b2 = w_prepared, b_prepared

    if use_single:
        vmem_limit = int(min(budget,
                             max(32 * _MIB, _single_pass_bytes(tm_eff) + 4 * _MIB)))
        cost = pl.CostEstimate(
            flops=2 * M_pad * H_pad * V_pad,
            transcendentals=M_pad * V_pad,
            bytes_accessed=(M_pad * H_pad * in_item
                            + grid_m * H_pad * V_pad * in_item  # w per M tile
                            + V_pad * 4
                            + M_pad * V_pad * out_item))
        out = pl.pallas_call(
            _fused_logsoftmax_kernel,
            out_shape=jax.ShapeDtypeStruct((M_pad, V_pad), out_dtype),
            grid_spec=pltpu.PrefetchScalarGridSpec(
                num_scalar_prefetch=0,
                grid=(grid_m, num_k),
                in_specs=[
                    pl.BlockSpec((tm_eff, tk_eff), lambda i, k: (i, k)),  # x
                    pl.BlockSpec((tk_eff, V_pad), lambda i, k: (k, 0)),   # w
                    pl.BlockSpec((1, V_pad), lambda i, k: (0, 0)),        # bias
                ],
                out_specs=pl.BlockSpec((tm_eff, V_pad), lambda i, k: (i, 0)),
                scratch_shapes=[pltpu.VMEM((tm_eff, V_pad), jnp.float32)],
            ),
            compiler_params=pltpu.CompilerParams(
                dimension_semantics=("parallel", "arbitrary"),
                vmem_limit_bytes=vmem_limit),
            cost_estimate=cost,
        )(x2, w2, b2)
    else:
        vmem_limit = int(min(budget,
                             max(32 * _MIB, _tiled_bytes(tm_eff) + 4 * _MIB)))
        cost1 = pl.CostEstimate(
            flops=2 * M_pad * H_pad * V_pad,
            transcendentals=M_pad * V_pad,
            bytes_accessed=(num_v * M_pad * H_pad * in_item     # x per V tile
                            + grid_m * H_pad * V_pad * in_item  # w per M tile
                            + V_pad * 4
                            + M_pad * V_pad * 4                 # logits (f32)
                            + M_pad * 4))
        logits, lse = pl.pallas_call(
            _logits_lse_kernel,
            out_shape=(jax.ShapeDtypeStruct((M_pad, V_pad), jnp.float32),
                       jax.ShapeDtypeStruct((M_pad, 1), jnp.float32)),
            grid_spec=pltpu.PrefetchScalarGridSpec(
                num_scalar_prefetch=0,
                grid=(grid_m, num_v, num_k),
                in_specs=[
                    pl.BlockSpec((tm_eff, tk_eff), lambda i, j, k: (i, k)),  # x
                    pl.BlockSpec((tk_eff, tv_eff), lambda i, j, k: (k, j)),  # w
                    pl.BlockSpec((1, tv_eff), lambda i, j, k: (0, j)),       # bias
                ],
                out_specs=[
                    pl.BlockSpec((tm_eff, tv_eff), lambda i, j, k: (i, j)),  # logits
                    pl.BlockSpec((tm_eff, 1), lambda i, j, k: (i, 0)),       # lse
                ],
                scratch_shapes=[
                    pltpu.VMEM((tm_eff, tv_eff), jnp.float32),  # K accumulator
                    pltpu.VMEM((tm_eff, 1), jnp.float32),       # running max
                    pltpu.VMEM((tm_eff, 1), jnp.float32),       # running sum
                ],
            ),
            compiler_params=pltpu.CompilerParams(
                dimension_semantics=("parallel", "arbitrary", "arbitrary"),
                vmem_limit_bytes=vmem_limit),
            cost_estimate=cost1,
        )(x2, w2, b2)

        norm_bytes = (2 * tm_eff * tv_eff * 4 + 2 * tm_eff * 4
                      + 2 * tm_eff * tv_eff * out_item)
        cost2 = pl.CostEstimate(
            flops=M_pad * V_pad,
            transcendentals=0,
            bytes_accessed=(M_pad * V_pad * 4 + M_pad * 4
                            + M_pad * V_pad * out_item))
        out = pl.pallas_call(
            _normalize_kernel,
            out_shape=jax.ShapeDtypeStruct((M_pad, V_pad), out_dtype),
            grid_spec=pltpu.PrefetchScalarGridSpec(
                num_scalar_prefetch=0,
                grid=(grid_m, num_v),
                in_specs=[
                    pl.BlockSpec((tm_eff, tv_eff), lambda i, j: (i, j)),
                    pl.BlockSpec((tm_eff, 1), lambda i, j: (i, 0)),
                ],
                out_specs=pl.BlockSpec((tm_eff, tv_eff), lambda i, j: (i, j)),
            ),
            compiler_params=pltpu.CompilerParams(
                dimension_semantics=("parallel", "parallel"),
                vmem_limit_bytes=int(min(budget,
                                         max(32 * _MIB, norm_bytes + 4 * _MIB)))),
            cost_estimate=cost2,
        )(logits, lse)

    return out[:M, :V].reshape(B, S, V)


def masked_log_model(x, w, b, *, compute_dtype=jnp.bfloat16, tm=512, tk=1024,
                     tv=1024, out_dtype=None):
    """Convenience wrapper matching MaskedLogModel.forward.  For repeated calls
    run prepare_params once and call masked_log_model_prepared directly (keeps
    the weight cast/pad out of the hot path)."""
    w2, b2 = prepare_params(w, b, compute_dtype=compute_dtype, tk=tk, tv=tv)
    return masked_log_model_prepared(x, w2, b2, vocab_size=w.shape[1],
                                     tm=tm, tk=tk, tv=tv, out_dtype=out_dtype)


def _reference(x, w, b):
    logits = jnp.einsum("bsh,hv->bsv", x, w) + b
    return jax.nn.log_softmax(logits, axis=-1)


if __name__ == "__main__":
    # Shapes implied by MaskedLogModel.forward: x [batch, seq, hidden] -> [batch, seq, vocab].
    batch, seq, hidden, vocab = 2, 8, 32, 128

    key = jax.random.PRNGKey(0)
    kx, kw, kb, kx2, kw2, kb2 = jax.random.split(key, 6)

    x = jax.random.normal(kx, (batch, seq, hidden), dtype=jnp.float32)
    # PyTorch nn.Linear stores weight as [vocab, hidden]; the kernel takes [hidden, vocab].
    w = jax.random.normal(kw, (hidden, vocab), dtype=jnp.float32) * 0.02
    b = jax.random.normal(kb, (vocab,), dtype=jnp.float32) * 0.02

    ref = _reference(x, w, b)

    # --- Fused single-pass path (small vocab), bf16 and f32 compute.
    out_bf16 = jax.block_until_ready(masked_log_model(x, w, b))
    w_f32, b_f32 = prepare_params(w, b, compute_dtype=jnp.float32)
    out_f32 = jax.block_until_ready(
        masked_log_model_prepared(x, w_f32, b_f32, vocab_size=vocab))

    assert out_bf16.shape == (batch, seq, vocab)
    assert out_f32.shape == (batch, seq, vocab)
    assert jnp.allclose(out_f32, ref, atol=1e-4, rtol=1e-4), "f32 single-pass mismatch"
    assert jnp.allclose(out_bf16, ref, atol=5e-2, rtol=5e-2), "bf16 single-pass mismatch"

    # --- V-tiled two-pass path (online log-sum-exp), forced via small tiles so
    #     it is exercised even at these small shapes (num_v=4, num_k=2).
    b2_, s2_, h2_, v2_ = 2, 32, 256, 1024
    x_big = jax.random.normal(kx2, (b2_, s2_, h2_), dtype=jnp.float32)
    w_big = jax.random.normal(kw2, (h2_, v2_), dtype=jnp.float32) * 0.02
    b_big = jax.random.normal(kb2, (v2_,), dtype=jnp.float32) * 0.02
    ref2 = _reference(x_big, w_big, b_big)

    wp, bp = prepare_params(w_big, b_big, compute_dtype=jnp.float32, tk=128, tv=256)
    out_tiled = jax.block_until_ready(
        masked_log_model_prepared(x_big, wp, bp, vocab_size=v2_,
                                  tk=128, tv=256, force_v_tiling=True))
    out_single = jax.block_until_ready(
        masked_log_model_prepared(x_big, wp, bp, vocab_size=v2_,
                                  tk=128, tv=256, force_v_tiling=False))

    assert out_tiled.shape == (b2_, s2_, v2_)
    # Tiled and single-pass paths must agree tightly (same dot precision).
    assert jnp.allclose(out_tiled, out_single, atol=1e-5, rtol=1e-5), \
        "V-tiled vs single-pass mismatch"
    # Loose tolerance vs the XLA reference absorbs default matmul precision.
    assert jnp.allclose(out_tiled, ref2, atol=5e-3, rtol=5e-3), \
        "V-tiled mismatch vs reference"

    print("KERNEL_OK")
</pallas_src>

<mosaic_0001>
module attributes {stable_mosaic.version = 11 : i64} {
  func.func @_fused_logsoftmax_kernel(%arg0: i32, %arg1: i32, %arg2: memref<16x32xbf16, #tpu.memory_space<vmem>>, %arg3: memref<32x128xbf16, #tpu.memory_space<vmem>>, %arg4: memref<1x128xf32, #tpu.memory_space<vmem>>, %arg5: memref<16x128xf32, #tpu.memory_space<vmem>>, %arg6: memref<16x128xf32, #tpu.memory_space<vmem>>) attributes {dimension_semantics = [#tpu.dimension_semantics<parallel>, #tpu.dimension_semantics<arbitrary>], iteration_bounds = array<i64: 1, 1>, scalar_prefetch = 0 : i64, scratch_operands = 1 : i64, tpu.core_type = #tpu.core_type<tc>, window_params = [{transform_indices = @transform_0, window_bounds = array<i64: 16, 32>}, {transform_indices = @transform_1, window_bounds = array<i64: 32, 128>}, {pipeline_mode = #tpu.pipeline_mode<synchronous>, transform_indices = @transform_2, window_bounds = array<i64: 1, 128>}, {transform_indices = @transform_3, window_bounds = array<i64: 16, 128>}]} {
    %c0 = arith.constant 0 : index
    %c0_0 = arith.constant 0 : index
    %0 = vector.load %arg2[%c0, %c0_0] : memref<16x32xbf16, #tpu.memory_space<vmem>>, vector<16x32xbf16>
    %c0_1 = arith.constant 0 : index
    %c0_2 = arith.constant 0 : index
    %1 = vector.load %arg3[%c0_1, %c0_2] : memref<32x128xbf16, #tpu.memory_space<vmem>>, vector<32x128xbf16>
    %cst = arith.constant dense<0.000000e+00> : vector<16x128xf32>
    %2 = tpu.matmul %0, %1, %cst {dimension_numbers = #tpu.dot_dimension_numbers<[1], [0], [0], [1], [0, 0, 1, 1], [], []>} : vector<16x32xbf16>, vector<32x128xbf16>, vector<16x128xf32> -> vector<16x128xf32>
    %c0_i32 = arith.constant 0 : i32
    %3 = arith.cmpi eq, %arg1, %c0_i32 : i32
    %4 = arith.extui %3 : i1 to i32
    %c0_i32_3 = arith.constant 0 : i32
    %5 = arith.cmpi ne, %4, %c0_i32_3 : i32
    scf.if %5 {
      %c0_8 = arith.constant 0 : index
      %c0_9 = arith.constant 0 : index
      %12 = vector.load %arg4[%c0_8, %c0_9] : memref<1x128xf32, #tpu.memory_space<vmem>>, vector<1x128xf32>
      %13 = vector.broadcast %12 : vector<1x128xf32> to vector<16x128xf32>
      %14 = arith.addf %2, %13 : vector<16x128xf32>
      %c0_10 = arith.constant 0 : index
      %c0_11 = arith.constant 0 : index
      %15 = vector.load %arg6[%c0_10, %c0_11] : memref<16x128xf32, #tpu.memory_space<vmem>>, vector<16x128xf32>
      tpu.vector_store %arg6[%c0_10, %c0_11], %14 {strides = array<i32>} : memref<16x128xf32, #tpu.memory_space<vmem>>, vector<16x128xf32>,
    } else {
    }
    %c0_i32_4 = arith.constant 0 : i32
    %6 = arith.cmpi sgt, %arg1, %c0_i32_4 : i32
    %7 = arith.extui %6 : i1 to i32
    %c0_i32_5 = arith.constant 0 : i32
    %8 = arith.cmpi ne, %7, %c0_i32_5 : i32
    scf.if %8 {
      %c0_8 = arith.constant 0 : index
      %c0_9 = arith.constant 0 : index
      %12 = vector.load %arg6[%c0_8, %c0_9] : memref<16x128xf32, #tpu.memory_space<vmem>>, vector<16x128xf32>
      %13 = arith.addf %12, %2 : vector<16x128xf32>
      %c0_10 = arith.constant 0 : index
      %c0_11 = arith.constant 0 : index
      %14 = vector.load %arg6[%c0_10, %c0_11] : memref<16x128xf32, #tpu.memory_space<vmem>>, vector<16x128xf32>
      tpu.vector_store %arg6[%c0_10, %c0_11], %13 {strides = array<i32>} : memref<16x128xf32, #tpu.memory_space<vmem>>, vector<16x128xf32>,
    } else {
    }
    %c0_i32_6 = arith.constant 0 : i32
    %9 = arith.cmpi eq, %arg1, %c0_i32_6 : i32
    %10 = arith.extui %9 : i1 to i32
    %c0_i32_7 = arith.constant 0 : i32
    %11 = arith.cmpi ne, %10, %c0_i32_7 : i32
    scf.if %11 {
      %c0_8 = arith.constant 0 : index
      %c0_9 = arith.constant 0 : index
      %12 = vector.load %arg6[%c0_8, %c0_9] : memref<16x128xf32, #tpu.memory_space<vmem>>, vector<16x128xf32>
      %cst_10 = arith.constant dense<0xFF800000> : vector<16xf32>
      %13 = vector.multi_reduction <maximumf>, %12, %cst_10 [1] : vector<16x128xf32> to vector<16xf32>
      %14 = vector.shape_cast %13 : vector<16xf32> to vector<16x1xf32>
      %15 = vector.broadcast %14 : vector<16x1xf32> to vector<16x128xf32>
      %16 = arith.subf %12, %15 : vector<16x128xf32>
      %c0_11 = arith.constant 0 : index
      %c0_12 = arith.constant 0 : index
      %17 = vector.load %arg6[%c0_11, %c0_12] : memref<16x128xf32, #tpu.memory_space<vmem>>, vector<16x128xf32>
      tpu.vector_store %arg6[%c0_11, %c0_12], %16 {strides = array<i32>} : memref<16x128xf32, #tpu.memory_space<vmem>>, vector<16x128xf32>,
      %18 = math.exp %16 : vector<16x128xf32>
      %cst_13 = arith.constant dense<0.000000e+00> : vector<16xf32>
      %19 = vector.multi_reduction <add>, %18, %cst_13 [1] : vector<16x128xf32> to vector<16xf32>
      %20 = vector.shape_cast %19 : vector<16xf32> to vector<16x1xf32>
      %21 = math.log %20 : vector<16x1xf32>
      %c0_14 = arith.constant 0 : index
      %c0_15 = arith.constant 0 : index
      %22 = vector.load %arg6[%c0_14, %c0_15] : memref<16x128xf32, #tpu.memory_space<vmem>>, vector<16x128xf32>
      %23 = vector.broadcast %21 : vector<16x1xf32> to vector<16x128xf32>
      %24 = arith.subf %22, %23 : vector<16x128xf32>
      %c0_16 = arith.constant 0 : index
      %c0_17 = arith.constant 0 : index
      %25 = vector.load %arg5[%c0_16, %c0_17] : memref<16x128xf32, #tpu.memory_space<vmem>>, vector<16x128xf32>
      tpu.vector_store %arg5[%c0_16, %c0_17], %24 {strides = array<i32>} : memref<16x128xf32, #tpu.memory_space<vmem>>, vector<16x128xf32>,
    } else {
    }
    return
  }
  func.func @transform_0(%arg0: i32, %arg1: i32) -> (i32, i32) {
    %c0_i32 = arith.constant 0 : i32
    return %arg0, %arg1 : i32, i32
  }
  func.func @transform_1(%arg0: i32, %arg1: i32) -> (i32, i32) {
    %c0_i32 = arith.constant 0 : i32
    %c0_i32_0 = arith.constant 0 : i32
    return %arg1, %c0_i32 : i32, i32
  }
  func.func @transform_2(%arg0: i32, %arg1: i32) -> (i32, i32) {
    %c0_i32 = arith.constant 0 : i32
    %c0_i32_0 = arith.constant 0 : i32
    %c0_i32_1 = arith.constant 0 : i32
    return %c0_i32, %c0_i32_0 : i32, i32
  }
  func.func @transform_3(%arg0: i32, %arg1: i32) -> (i32, i32) {
    %c0_i32 = arith.constant 0 : i32
    %c0_i32_0 = arith.constant 0 : i32
    return %arg0, %c0_i32 : i32, i32
  }
}

</mosaic_0001>

<bundles_post_ra>
// kernel: masked_log_model_prepared.1
= control target key start
LH: loop header
LB: loop body
LE: loop exit
PB: predicated region body
PF: predicated region fallthrough
CT: control target
= control target key end

     0   :  { %v212_v1 = vmov 0.0   ;;  %vm213_vm0 = vmmov 0   ;;  %s261_s0 = inlined_call_operand.vmem [shape: bf16[16,32], index: 0, kind: input, shape index: {}]   ;;  %s262_s1 = inlined_call_operand.vmem [shape: bf16[32,128], index: 1, kind: input, shape index: {}]   ;;  %s263_s2 = inlined_call_operand.vmem [shape: f32[1,128], index: 2, kind: input, shape index: {}]   ;;  %s264_s3 = inlined_call_operand.hbm [shape: f32[16,128], index: 3, kind: output, shape index: {}]  }
   0x1   :  { %v177_v0 = vld [vmem:[%s262_s1] sm:$0xff]   ;;  %164 = vmatprep.subr.bf16.mxu0 %v212_v1  ;;  %v178_v2 = vld [vmem:[%s262_s1 + $0x8] sm:$0xff]   ;;  %168 = vmatprep.mubr.msk.bf16.mxu0 %vm213_vm0, %v212_v1 }
   0x2   :  { %165 = vmatpush3.bf16.msra.mxu0 %v177_v0 }
   0x3   :  { %166 = vmatprep.subr.bf16.mxu0 %v212_v1 }
   0x4   :  { %8 = vsyncpa [#allocation4], 0  ;;  %v179_v3 = vld [vmem:[%s261_s0] sm:$0xff]   ;;  %vm39_vm1 = vcmask 261120   ;;  %s214_s0 = smov [#allocation3]  }
   0x5   :  { %v160_v4 = vld [vmem:[%s263_s2] ss:$0 sm:$0xff]  ;;  %s145_s1 = sshll.u32 %s214_s0, 4  ;;  %s146_s1 = int_to_ptr.vmem [resolvable:$true] %s145_s1 }
   0x6   :  { %167 = vmatpush3.bf16.msra.mxu0 %v178_v2  ;;  %s188_s2 = scalar_lea.vmem %s146_s1, 256  ;;  %p193_p1 = scmp.lt.s32.totalorder %s146_s1, %s146_s1 }
   0x7   :  { %p189_p0 = scmp.ne.s32.totalorder %s146_s1, %s188_s2  ;;  %p194_p2 = scmp.lt.s32.totalorder %s188_s2, %s188_s2 }
   0x9   :  { %169 = vmatmul.mubr.msk.bf16.vlgmr.msra.gmra.mrb[0].mxu0 %vm39_vm1, %v179_v3  ;;  %p195_p3 = por %p194_p2, %p193_p1 }
   0xb   :  { %p196_p4 = pnand %p195_p3, %p189_p0 }
  0xdc   :  { %v77_v5 = vpop.f32.mrb[0].mxu0 }
  0xdd   :  { %v95_v6 = vadd.f32 %v160_v4, %v77_v5  ;;  %v170_v7 = vpop.f32.mrb[1].mxu0 }
  0xde   :  { %v80_v8 = vpop.f32.mrb[2].mxu0 }
  0xdf   :  { %114 = vmax.xlane.f32.xlu0 %v95_v6  ;;  %v171_v9 = vpop.f32.mrb[3].mxu0  ;;  %v96_v10 = vadd.f32 %v160_v4, %v80_v8 }
  0xe3   :  { %116 = vmax.xlane.f32.xlu0 %v96_v10 }
 0x16c   :  { %v115_v11 = vpop.xlane.xlu0 %114 }
 0x16d   :  { %v118_v12 = vsub.f32 %v95_v6, %v115_v11 }
 0x16f   :  { %v122_v13 = vmul.f32 1.442695, %v118_v12 }
 0x170   :  { %v117_v14 = vpop.xlane.xlu0 %116 }
 0x171   :  { %v119_v15 = vsub.f32 %v96_v10, %v117_v14  ;;  %180 = vpow2.f32 %v122_v13 }
 0x173   :  { %v124_v16 = vmul.f32 1.442695, %v119_v15 }
 0x175   :  { %182 = vpow2.f32 %v124_v16 }
 0x17b   :  { %v181_v17 = vpop.eup %180 }
 0x17c   :  { %126 = vadd.xlane.f32.xlu1 %v181_v17 }
 0x17f   :  { %v183_v18 = vpop.eup %182 }
 0x180   :  { %128 = vadd.xlane.f32.xlu1 %v183_v18 }
 0x209   :  { %v127_v19 = vpop.xlane.xlu1 %126 }
 0x20a   :  { %184 = vlog2.f32 %v127_v19 }
 0x20d   :  { %v129_v20 = vpop.xlane.xlu1 %128 }
 0x20e   :  { %186 = vlog2.f32 %v129_v20 }
 0x214   :  { %v185_v21 = vpop.eup %184 }
 0x215   :  { %v131_v22 = vmul.f32 0.6931472, %v185_v21 }
 0x217   :  { %v136_v23 = vsub.f32 %v118_v12, %v131_v22 }
 0x218   :  { %v187_v24 = vpop.eup %186 }
 0x219   :  { %138 = vst [vmem:[#allocation3] sm:$0xff] %v136_v23  ;;  %v133_v25 = vmul.f32 0.6931472, %v187_v24 }
 0x21b   :  { %v137_v26 = vsub.f32 %v119_v15, %v133_v25 }
 0x21d   :  { %139 = vst [vmem:[#allocation3 + $0x8] sm:$0xff] %v137_v26 }
 0x21e   :  { %199 = shalt.err (!%p196_p4)
}
 0x21f   :  { %s200_s22 = scalar_lea.hbm %s264_s3, 256 }
 0x220   :  { %p201_p5 = scmp.ne.s32.totalorder %s264_s3, %s200_s22  ;;  %p204_p6 = scmp.lt.u32.totalorder %s200_s22, %s264_s3 }
 0x222   :  { %p206_p7 = pnand %p204_p6, %p201_p5 }
 0x224   :  { %209 = shalt.err (!%p206_p7)
}
 0x225   :  { %s215_s27 = smov 128   ;;  %s216_s28 = smov 8  }
 0x226   :  { %151 = dma.vmem_to_hbm [thread:$0]  %s146_s1, 256, %s264_s3, [#allocation4], %s215_s27, %s215_s27, %s216_s28  }
 0x227   :  { %210 = dma.done.wait [#allocation4], 256  }
 0x228   :  { %211 = vsyncadd [#allocation4], 4294967040 }
 0x229   :  { %155 = vsyncpa [#allocation4], 1 }

</bundles_post_ra>
